<compile_context>
chip_gen: v7x
topology: tpu7x:2x2x1
jax: 0.10.0
libtpu: 0.0.40
codegen_flags: <defaults>
</compile_context>

<pallas_src>
import jax
import jax.numpy as jnp
from jax import lax
from jax.experimental import pallas as pl
from jax.experimental.pallas import tpu as pltpu
import numpy as np

NEG_FILL = -1e30  # finite stand-in for -inf so masked rows stay well-defined
PREC = lax.Precision.HIGHEST  # keep value matmuls exact f32 (see header note)


def _leaky_relu(x, slope=0.2):
    return jnp.where(x >= 0, x, slope * x)


def gat_main_block_kernel(node_ref, edge_t_ref, eidx_ref,
                          wn_ref, bn_ref, we_node_ref, we_edge_ref, be_ref,
                          out_ref):
    N, H = node_ref.shape
    E = edge_t_ref.shape[1]

    # ---- node_linear: h = node_attr @ Wn + bn                          [N, H]
    h = jnp.dot(node_ref[...], wn_ref[...], precision=PREC,
                preferred_element_type=jnp.float32) + bn_ref[...]

    # ---- fused rank-1 projections: col 0 = src contribution, col 1 = dst.
    a_node = jnp.dot(h, we_node_ref[...], precision=PREC,
                     preferred_element_type=jnp.float32)            # [N, 2]

    # ---- edge_attr contribution, lane-major canonical matmul [1,H]@[H,E].
    e_edge_row = jnp.dot(we_edge_ref[...], edge_t_ref[...], precision=PREC,
                         preferred_element_type=jnp.float32)        # [1, E]

    # ---- one-hot membership masks [N, E] (N = sublanes, E = lanes).
    eidx = eidx_ref[...]                                            # [2, E]
    node_ids = lax.broadcasted_iota(jnp.int32, (N, E), 0)
    src_mask = node_ids == eidx[0:1, :]                             # [N, E]
    dst_mask = node_ids == eidx[1:2, :]                             # [N, E]

    # ---- VPU gathers: exactly one True per edge column, so masked select +
    #      sublane sum is a bit-exact gather (no MXU, no HIGHEST passes).
    a_src_row = jnp.sum(jnp.where(src_mask, a_node[:, 0:1], 0.0),
                        axis=0, keepdims=True)                      # [1, E]
    a_dst_row = jnp.sum(jnp.where(dst_mask, a_node[:, 1:2], 0.0),
                        axis=0, keepdims=True)                      # [1, E]

    # ---- LeakyReLU edge logits, lane-major.
    e_row = _leaky_relu(e_edge_row + a_src_row + a_dst_row + be_ref[...])  # [1,E]

    # ---- segment softmax (numerator) grouped by src node, all on VPU/XLU.
    per_node = jnp.where(src_mask, e_row, NEG_FILL)                 # [N, E]
    node_max = jnp.max(per_node, axis=1, keepdims=True)             # [N, 1]
    edge_max_row = jnp.sum(jnp.where(src_mask, node_max, 0.0),
                           axis=0, keepdims=True)                   # [1, E]
    exp_row = jnp.exp(e_row - edge_max_row)                         # [1, E]

    weighted_src = jnp.where(src_mask, exp_row, 0.0)                # [N, E]
    node_sum = jnp.sum(weighted_src, axis=1, keepdims=True)         # [N, 1]

    # ---- per-node reciprocal on the EUP (approx rcp + one Newton step gives
    #      ~2^-24 relative error); guard isolated nodes (sum == 0) so their
    #      aggregated row stays exactly 0.
    safe_sum = jnp.where(node_sum > 0.0, node_sum, 1.0)
    r = pl.reciprocal(safe_sum, approx=True)
    inv_node_sum = r * (2.0 - safe_sum * r)                         # [N, 1]

    # ---- unnormalized weighted adjacency A[i,j] = sum_{edges i->j} exp, then
    #      aggregate and fold the softmax normalization AFTER the matmul.
    dst_oh = dst_mask.astype(jnp.float32)                           # [N, E]
    adj_unnorm = lax.dot_general(weighted_src, dst_oh,
                                 (((1,), (1,)), ((), ())),
                                 precision=PREC,
                                 preferred_element_type=jnp.float32)  # [N, N]
    adj_sum = jnp.dot(adj_unnorm, h, precision=PREC,
                      preferred_element_type=jnp.float32) * inv_node_sum  # [N,H]

    out_ref[...] = _leaky_relu(h + adj_sum).astype(out_ref.dtype)


def gat_main_block(node_attr, edge_attr, edge_index, num_nodes, params):
    # num_nodes accepted for API parity with the torch module (unused: the
    # torch forward also uses node_attr.size(0) as dim_size).
    del num_nodes
    wn, bn, we, be = params
    N, H = node_attr.shape

    # Wrapper-side layout plumbing (free in XLA):
    #  * split the [3H,1] edge_linear weight into its edge / src / dst parts,
    #  * fuse src|dst columns into one [H,2] matrix,
    #  * transpose edge_attr to [H,E] so E sits on lanes inside the kernel.
    we_edge = we[0:H, :].T                                          # [1, H]
    we_node = jnp.concatenate([we[H:2 * H, :], we[2 * H:3 * H, :]], axis=1)  # [H,2]
    edge_attr_t = edge_attr.T                                       # [H, E]

    vmem = pl.BlockSpec(memory_space=pltpu.MemorySpace.VMEM)
    return pl.pallas_call(
        gat_main_block_kernel,
        out_shape=jax.ShapeDtypeStruct((N, H), node_attr.dtype),
        in_specs=[vmem] * 8,
        out_specs=vmem,
        compiler_params=pltpu.CompilerParams(
            vmem_limit_bytes=32 * 1024 * 1024),
    )(node_attr, edge_attr_t, edge_index.astype(jnp.int32),
      wn, bn, we_node, we_edge, be)


def ref_forward(node_attr, edge_attr, edge_index, params):
    """Pure-JAX reference mirroring the PyTorch semantics (true f32 matmuls)."""
    wn, bn, we, be = params
    h = jnp.dot(node_attr, wn, precision=PREC) + bn
    src, dst = edge_index[0], edge_index[1]
    concat = jnp.concatenate([edge_attr, h[src], h[dst]], axis=1)
    e = (jnp.dot(concat, we, precision=PREC) + be).reshape(-1)
    e = jnp.where(e >= 0, e, 0.2 * e)
    N = node_attr.shape[0]
    seg_max = jax.ops.segment_max(e, src, num_segments=N)
    exp_e = jnp.exp(e - seg_max[src])
    seg_sum = jax.ops.segment_sum(exp_e, src, num_segments=N)
    a = exp_e / seg_sum[src]
    adj = jax.ops.segment_sum(a[:, None] * h[dst], src, num_segments=N)
    out = h + adj
    return jnp.where(out >= 0, out, 0.2 * out)


if __name__ == "__main__":
    H = 32   # hidden_dim
    N = 16   # num nodes
    E = 48   # num edges

    key = jax.random.PRNGKey(0)
    k_node, k_edge, k_src, k_dst, k_wn, k_bn, k_we, k_be = jax.random.split(key, 8)

    node_attr = jax.random.normal(k_node, (N, H), dtype=jnp.float32)
    edge_attr = jax.random.normal(k_edge, (E, H), dtype=jnp.float32)
    edge_index = jnp.stack([
        jax.random.randint(k_src, (E,), 0, N, dtype=jnp.int32),
        jax.random.randint(k_dst, (E,), 0, N, dtype=jnp.int32),
    ], axis=0)                                    # [2, E]
    num_nodes = jnp.array(N, dtype=jnp.int32)

    # Deterministic parameter init (torch nn.Linear style uniform bounds),
    # stored as (in_dim, out_dim).
    bn_bound = 1.0 / np.sqrt(H)
    be_bound = 1.0 / np.sqrt(3 * H)
    wn = jax.random.uniform(k_wn, (H, H), jnp.float32, -bn_bound, bn_bound)
    bn = jax.random.uniform(k_bn, (1, H), jnp.float32, -bn_bound, bn_bound)
    we = jax.random.uniform(k_we, (3 * H, 1), jnp.float32, -be_bound, be_bound)
    be = jax.random.uniform(k_be, (1, 1), jnp.float32, -be_bound, be_bound)
    params = (wn, bn, we, be)

    out = gat_main_block(node_attr, edge_attr, edge_index, num_nodes, params)
    out = jax.block_until_ready(out)

    ref = ref_forward(node_attr, edge_attr, edge_index, params)
    ref = jax.block_until_ready(ref)

    assert out.shape == (N, H) and out.dtype == jnp.float32
    np.testing.assert_allclose(np.asarray(out), np.asarray(ref),
                               rtol=1e-5, atol=1e-5)
    print("KERNEL_OK")
</pallas_src>

<mosaic_0001>
module attributes {stable_mosaic.version = 11 : i64} {
  func.func @gat_main_block_kernel(%arg0: memref<16x32xf32, #tpu.memory_space<vmem>>, %arg1: memref<32x48xf32, #tpu.memory_space<vmem>>, %arg2: memref<2x48xi32, #tpu.memory_space<vmem>>, %arg3: memref<32x32xf32, #tpu.memory_space<vmem>>, %arg4: memref<1x32xf32, #tpu.memory_space<vmem>>, %arg5: memref<32x2xf32, #tpu.memory_space<vmem>>, %arg6: memref<1x32xf32, #tpu.memory_space<vmem>>, %arg7: memref<1x1xf32, #tpu.memory_space<vmem>>, %arg8: memref<16x32xf32, #tpu.memory_space<vmem>>) attributes {dimension_semantics = [], scalar_prefetch = 0 : i64, scratch_operands = 0 : i64, tpu.core_type = #tpu.core_type<tc>} {
    %c0 = arith.constant 0 : index
    %c0_0 = arith.constant 0 : index
    %0 = vector.load %arg0[%c0, %c0_0] : memref<16x32xf32, #tpu.memory_space<vmem>>, vector<16x32xf32>
    %c0_1 = arith.constant 0 : index
    %c0_2 = arith.constant 0 : index
    %1 = vector.load %arg3[%c0_1, %c0_2] : memref<32x32xf32, #tpu.memory_space<vmem>>, vector<32x32xf32>
    %cst = arith.constant dense<0.000000e+00> : vector<16x32xf32>
    %2 = tpu.matmul %0, %1, %cst {dimension_numbers = #tpu.dot_dimension_numbers<[1], [0], [0], [1], [0, 0, 1, 1], [], []>, precision = #tpu.contract_precision<fp32>} : vector<16x32xf32>, vector<32x32xf32>, vector<16x32xf32> -> vector<16x32xf32>
    %c0_3 = arith.constant 0 : index
    %c0_4 = arith.constant 0 : index
    %3 = vector.load %arg4[%c0_3, %c0_4] : memref<1x32xf32, #tpu.memory_space<vmem>>, vector<1x32xf32>
    %4 = vector.broadcast %3 : vector<1x32xf32> to vector<16x32xf32>
    %5 = arith.addf %2, %4 : vector<16x32xf32>
    %c0_5 = arith.constant 0 : index
    %c0_6 = arith.constant 0 : index
    %6 = vector.load %arg5[%c0_5, %c0_6] : memref<32x2xf32, #tpu.memory_space<vmem>>, vector<32x2xf32>
    %cst_7 = arith.constant dense<0.000000e+00> : vector<16x2xf32>
    %7 = tpu.matmul %5, %6, %cst_7 {dimension_numbers = #tpu.dot_dimension_numbers<[1], [0], [0], [1], [0, 0, 1, 1], [], []>, precision = #tpu.contract_precision<fp32>} : vector<16x32xf32>, vector<32x2xf32>, vector<16x2xf32> -> vector<16x2xf32>
    %c0_8 = arith.constant 0 : index
    %c0_9 = arith.constant 0 : index
    %8 = vector.load %arg6[%c0_8, %c0_9] : memref<1x32xf32, #tpu.memory_space<vmem>>, vector<1x32xf32>
    %c0_10 = arith.constant 0 : index
    %c0_11 = arith.constant 0 : index
    %9 = vector.load %arg1[%c0_10, %c0_11] : memref<32x48xf32, #tpu.memory_space<vmem>>, vector<32x48xf32>
    %cst_12 = arith.constant dense<0.000000e+00> : vector<1x48xf32>
    %10 = tpu.matmul %8, %9, %cst_12 {dimension_numbers = #tpu.dot_dimension_numbers<[1], [0], [0], [1], [0, 0, 1, 1], [], []>, precision = #tpu.contract_precision<fp32>} : vector<1x32xf32>, vector<32x48xf32>, vector<1x48xf32> -> vector<1x48xf32>
    %c0_13 = arith.constant 0 : index
    %c0_14 = arith.constant 0 : index
    %11 = vector.load %arg2[%c0_13, %c0_14] : memref<2x48xi32, #tpu.memory_space<vmem>>, vector<2x48xi32>
    %12 = tpu.iota {dimensions = array<i32: 0>} : vector<16x48xi32>
    %13 = vector.extract_strided_slice %11 {offsets = [0, 0], sizes = [1, 48], strides = [1, 1]} : vector<2x48xi32> to vector<1x48xi32>
    %14 = vector.broadcast %13 : vector<1x48xi32> to vector<16x48xi32>
    %15 = arith.cmpi eq, %12, %14 : vector<16x48xi32>
    %16 = vector.extract_strided_slice %11 {offsets = [1, 0], sizes = [1, 48], strides = [1, 1]} : vector<2x48xi32> to vector<1x48xi32>
    %17 = vector.broadcast %16 : vector<1x48xi32> to vector<16x48xi32>
    %18 = arith.cmpi eq, %12, %17 : vector<16x48xi32>
    %19 = vector.extract_strided_slice %7 {offsets = [0, 0], sizes = [16, 1], strides = [1, 1]} : vector<16x2xf32> to vector<16x1xf32>
    %cst_15 = arith.constant 0.000000e+00 : f32
    %20 = vector.shape_cast %19 : vector<16x1xf32> to vector<16x1xf32>
    %21 = vector.broadcast %20 : vector<16x1xf32> to vector<16x48xf32>
    %22 = vector.broadcast %cst_15 : f32 to vector<16x48xf32>
    %23 = arith.select %15, %21, %22 : vector<16x48xi1>, vector<16x48xf32>
    %cst_16 = arith.constant dense<0.000000e+00> : vector<48xf32>
    %24 = vector.multi_reduction <add>, %23, %cst_16 [0] : vector<16x48xf32> to vector<48xf32>
    %25 = vector.shape_cast %24 : vector<48xf32> to vector<1x48xf32>
    %26 = vector.extract_strided_slice %7 {offsets = [0, 1], sizes = [16, 1], strides = [1, 1]} : vector<16x2xf32> to vector<16x1xf32>
    %cst_17 = arith.constant 0.000000e+00 : f32
    %27 = vector.shape_cast %26 : vector<16x1xf32> to vector<16x1xf32>
    %28 = vector.broadcast %27 : vector<16x1xf32> to vector<16x48xf32>
    %29 = vector.broadcast %cst_17 : f32 to vector<16x48xf32>
    %30 = arith.select %18, %28, %29 : vector<16x48xi1>, vector<16x48xf32>
    %cst_18 = arith.constant dense<0.000000e+00> : vector<48xf32>
    %31 = vector.multi_reduction <add>, %30, %cst_18 [0] : vector<16x48xf32> to vector<48xf32>
    %32 = vector.shape_cast %31 : vector<48xf32> to vector<1x48xf32>
    %33 = arith.addf %10, %25 : vector<1x48xf32>
    %34 = arith.addf %33, %32 : vector<1x48xf32>
    %c0_19 = arith.constant 0 : index
    %c0_20 = arith.constant 0 : index
    %35 = vector.load %arg7[%c0_19, %c0_20] : memref<1x1xf32, #tpu.memory_space<vmem>>, vector<1x1xf32>
    %36 = vector.broadcast %35 : vector<1x1xf32> to vector<1x48xf32>
    %37 = arith.addf %34, %36 : vector<1x48xf32>
    %cst_21 = arith.constant 0.000000e+00 : f32
    %38 = vector.broadcast %cst_21 : f32 to vector<1x48xf32>
    %39 = arith.cmpf oge, %37, %38 : vector<1x48xf32>
    %cst_22 = arith.constant 2.000000e-01 : f32
    %40 = vector.broadcast %cst_22 : f32 to vector<1x48xf32>
    %41 = arith.mulf %40, %37 : vector<1x48xf32>
    %42 = arith.select %39, %37, %41 : vector<1x48xi1>, vector<1x48xf32>
    %cst_23 = arith.constant -1.000000e+30 : f32
    %43 = vector.shape_cast %42 : vector<1x48xf32> to vector<1x48xf32>
    %44 = vector.broadcast %43 : vector<1x48xf32> to vector<16x48xf32>
    %45 = vector.broadcast %cst_23 : f32 to vector<16x48xf32>
    %46 = arith.select %15, %44, %45 : vector<16x48xi1>, vector<16x48xf32>
    %cst_24 = arith.constant dense<0xFF800000> : vector<16xf32>
    %47 = vector.multi_reduction <maximumf>, %46, %cst_24 [1] : vector<16x48xf32> to vector<16xf32>
    %48 = vector.shape_cast %47 : vector<16xf32> to vector<16x1xf32>
    %cst_25 = arith.constant 0.000000e+00 : f32
    %49 = vector.shape_cast %48 : vector<16x1xf32> to vector<16x1xf32>
    %50 = vector.broadcast %49 : vector<16x1xf32> to vector<16x48xf32>
    %51 = vector.broadcast %cst_25 : f32 to vector<16x48xf32>
    %52 = arith.select %15, %50, %51 : vector<16x48xi1>, vector<16x48xf32>
    %cst_26 = arith.constant dense<0.000000e+00> : vector<48xf32>
    %53 = vector.multi_reduction <add>, %52, %cst_26 [0] : vector<16x48xf32> to vector<48xf32>
    %54 = vector.shape_cast %53 : vector<48xf32> to vector<1x48xf32>
    %55 = arith.subf %42, %54 : vector<1x48xf32>
    %56 = math.exp %55 : vector<1x48xf32>
    %cst_27 = arith.constant 0.000000e+00 : f32
    %57 = vector.shape_cast %56 : vector<1x48xf32> to vector<1x48xf32>
    %58 = vector.broadcast %57 : vector<1x48xf32> to vector<16x48xf32>
    %59 = vector.broadcast %cst_27 : f32 to vector<16x48xf32>
    %60 = arith.select %15, %58, %59 : vector<16x48xi1>, vector<16x48xf32>
    %cst_28 = arith.constant dense<0.000000e+00> : vector<16xf32>
    %61 = vector.multi_reduction <add>, %60, %cst_28 [1] : vector<16x48xf32> to vector<16xf32>
    %62 = vector.shape_cast %61 : vector<16xf32> to vector<16x1xf32>
    %cst_29 = arith.constant 0.000000e+00 : f32
    %63 = vector.broadcast %cst_29 : f32 to vector<16x1xf32>
    %64 = arith.cmpf ogt, %62, %63 : vector<16x1xf32>
    %cst_30 = arith.constant 1.000000e+00 : f32
    %65 = vector.broadcast %cst_30 : f32 to vector<16x1xf32>
    %66 = arith.select %64, %62, %65 : vector<16x1xi1>, vector<16x1xf32>
    %67 = tpu.reciprocal %66 {approx = true} : vector<16x1xf32> -> vector<16x1xf32>
    %68 = arith.mulf %66, %67 : vector<16x1xf32>
    %cst_31 = arith.constant 2.000000e+00 : f32
    %69 = vector.broadcast %cst_31 : f32 to vector<16x1xf32>
    %70 = arith.subf %69, %68 : vector<16x1xf32>
    %71 = arith.mulf %67, %70 : vector<16x1xf32>
    %72 = arith.extui %18 : vector<16x48xi1> to vector<16x48xi32>
    %73 = arith.sitofp %72 : vector<16x48xi32> to vector<16x48xf32>
    %cst_32 = arith.constant dense<0.000000e+00> : vector<16x16xf32>
    %74 = tpu.matmul %60, %73, %cst_32 {dimension_numbers = #tpu.dot_dimension_numbers<[1], [1], [0], [0], [0, 0, 1, 0], [], []>, precision = #tpu.contract_precision<fp32>} : vector<16x48xf32>, vector<16x48xf32>, vector<16x16xf32> -> vector<16x16xf32>
    %cst_33 = arith.constant dense<0.000000e+00> : vector<16x32xf32>
    %75 = tpu.matmul %74, %5, %cst_33 {dimension_numbers = #tpu.dot_dimension_numbers<[1], [0], [0], [1], [0, 0, 1, 1], [], []>, precision = #tpu.contract_precision<fp32>} : vector<16x16xf32>, vector<16x32xf32>, vector<16x32xf32> -> vector<16x32xf32>
    %76 = vector.broadcast %71 : vector<16x1xf32> to vector<16x32xf32>
    %77 = arith.mulf %75, %76 : vector<16x32xf32>
    %78 = arith.addf %5, %77 : vector<16x32xf32>
    %cst_34 = arith.constant 0.000000e+00 : f32
    %79 = vector.broadcast %cst_34 : f32 to vector<16x32xf32>
    %80 = arith.cmpf oge, %78, %79 : vector<16x32xf32>
    %cst_35 = arith.constant 2.000000e-01 : f32
    %81 = vector.broadcast %cst_35 : f32 to vector<16x32xf32>
    %82 = arith.mulf %81, %78 : vector<16x32xf32>
    %83 = arith.select %80, %78, %82 : vector<16x32xi1>, vector<16x32xf32>
    %c0_36 = arith.constant 0 : index
    %c0_37 = arith.constant 0 : index
    %84 = vector.load %arg8[%c0_36, %c0_37] : memref<16x32xf32, #tpu.memory_space<vmem>>, vector<16x32xf32>
    tpu.vector_store %arg8[%c0_36, %c0_37], %83 {strides = array<i32>} : memref<16x32xf32, #tpu.memory_space<vmem>>, vector<16x32xf32>,
    return
  }
}

</mosaic_0001>

<bundles_post_ra>
// kernel: tpu_custom_call.1
= control target key start
LH: loop header
LB: loop body
LE: loop exit
PB: predicated region body
PF: predicated region fallthrough
CT: control target
= control target key end

     0   :  { %s3958_s0 = inlined_call_operand.hbm [shape: f32[16,32], index: 0, kind: input, shape index: {}]   ;;  %s3959_s1 = inlined_call_operand.vmem [shape: f32[32,48], index: 1, kind: input, shape index: {}]   ;;  %s3960_s2 = inlined_call_operand.vmem [shape: s32[2,48], index: 2, kind: input, shape index: {}]   ;;  %s3961_s3 = inlined_call_operand.hbm [shape: f32[32,32], index: 3, kind: input, shape index: {}]   ;;  %s3962_s4 = inlined_call_operand.vmem [shape: f32[1,32], index: 4, kind: input, shape index: {}]   ;;  %s3963_s5 = inlined_call_operand.vmem [shape: f32[32,2], index: 5, kind: input, shape index: {}]   ;;  %s3964_s6 = inlined_call_operand.vmem [shape: f32[1,32], index: 6, kind: input, shape index: {}]   ;;  %s3965_s7 = inlined_call_operand.<no memory space> [shape: f32[1,1], index: 7, kind: input, shape index: {}]   ;;  %s3966_s8 = inlined_call_operand.hbm [shape: f32[16,32], index: 8, kind: output, shape index: {}]  }
   0x1   :  { %v13_v0 = vstv %s3965_s7 }
   0x2   :  { %14 = vst [vmem:[#allocation2] sm:$0x1] %v13_v0 }
   0x3   :  { %15 = vsyncpa [#allocation4], 0 }
   0x4   :  { %16 = vsyncpa [#allocation7], 0 }
   0x5   :  { %17 = vsyncpa [#allocation5], 0  ;;  %s3577_s29 = smov [#allocation3]   ;;  %s3505_s11 = scalar_lea.hbm %s3958_s0, 256 }
   0x6   :  { %s23_s30 = sshll.u32 %s3577_s29, 4  ;;  %p3506_p0 = scmp.ne.s32.totalorder %s3958_s0, %s3505_s11  ;;  %s24_s30 = int_to_ptr.vmem [resolvable:$true] %s23_s30 }
   0x7   :  { %p3509_p1 = scmp.lt.u32.totalorder %s3505_s11, %s3958_s0 }
   0x9   :  { %p3511_p2 = pnand %p3509_p1, %p3506_p0 }
   0xb   :  { %3514 = shalt.err (!%p3511_p2)
}
   0xc   :  { %s3515_s7 = scalar_lea.vmem %s24_s30, 256  ;;  %p3520_p4 = scmp.lt.s32.totalorder %s24_s30, %s24_s30 }
   0xd   :  { %p3516_p3 = scmp.ne.s32.totalorder %s24_s30, %s3515_s7  ;;  %p3521_p5 = scmp.lt.s32.totalorder %s3515_s7, %s3515_s7 }
   0xf   :  { %p3522_p6 = por %p3521_p5, %p3520_p4 }
  0x11   :  { %p3523_p7 = pnand %p3522_p6, %p3516_p3 }
  0x13   :  { %3526 = shalt.err (!%p3523_p7)
}
  0x14   :  { %s3578_s16 = smov 128   ;;  %s3579_s17 = smov 8  }
  0x15   :  { %29 = dma.hbm_to_vmem [thread:$0]  %s3958_s0, 256, %s24_s30, [#allocation4], %s3578_s16, %s3578_s16, %s3579_s17  }
  0x16   :  { %s3580_s20 = smov [#allocation6]   ;;  %s3527_s24 = scalar_lea.hbm %s3961_s3, 512 }
  0x17   :  { %s39_s21 = sshll.u32 %s3580_s20, 4  ;;  %p3528_p8 = scmp.ne.s32.totalorder %s3961_s3, %s3527_s24  ;;  %s40_s21 = int_to_ptr.vmem [resolvable:$true] %s39_s21 }
  0x18   :  { %p3531_p9 = scmp.lt.u32.totalorder %s3527_s24, %s3961_s3 }
  0x1a   :  { %p3533_p10 = pnand %p3531_p9, %p3528_p8 }
  0x1c   :  { %3536 = shalt.err (!%p3533_p10)
}
  0x1d   :  { %s3537_s29 = scalar_lea.vmem %s40_s21, 512  ;;  %p3542_p12 = scmp.lt.s32.totalorder %s40_s21, %s40_s21 }
  0x1e   :  { %p3538_p11 = scmp.ne.s32.totalorder %s40_s21, %s3537_s29  ;;  %p3543_p13 = scmp.lt.s32.totalorder %s3537_s29, %s3537_s29 }
  0x20   :  { %p3544_p0 = por %p3543_p13, %p3542_p12 }
  0x22   :  { %p3545_p1 = pnand %p3544_p0, %p3538_p11 }
  0x24   :  { %3548 = shalt.err (!%p3545_p1)
}
  0x25   :  { %45 = dma.hbm_to_vmem [thread:$0]  %s3961_s3, 512, %s40_s21, [#allocation7], %s3578_s16, %s3578_s16, %s3579_s17  }
  0x26   :  { %3571 = dma.done.wait [#allocation4], 256  }
  0x27   :  { %3572 = vsyncadd [#allocation4], 4294967040 }
  0x28   :  { %3573 = dma.done.wait [#allocation7], 512  }
  0x29   :  { %3574 = vsyncadd [#allocation7], 4294966784  ;;  %vm73_vm0 = vcmask 261120   ;;  %v62_v1 = vld [vmem:[#allocation6] sm:$0xff]  ;;  %v63_v2 = vld [vmem:[#allocation6 + $0x8] sm:$0xff]  ;;  %vm3582_vm1 = vmmov 0  }
  0x2a   :  { %v64_v3 = vld [vmem:[#allocation6 + $0x10] sm:$0xff]  ;;  %v81_v4 = vand.u32 4294901760, %v62_v1  ;;  %v84_v5 = vand.u32 4294901760, %v63_v2  ;;  %v65_v6 = vld [vmem:[#allocation6 + $0x18] sm:$0xff]  ;;  %v611_v55 = vld [vmem:[%s3963_s5 + $0x18] sm:$0xff]  ;;  %vm1179_vm6 = vcmask 392192  }
  0x2b   :  { %v87_v7 = vand.u32 4294901760, %v64_v3  ;;  %v60_v8 = vld [vmem:[#allocation3] sm:$0xff]  ;;  %v61_v9 = vld [vmem:[#allocation3 + $0x8] sm:$0xff]  ;;  %v90_v10 = vand.u32 4294901760, %v65_v6  ;;  %v628_v57 = vand.u32 4294901760, %v611_v55  ;;  %vm3889_vm8 = vmpackc.low %vm1179_vm6, %vm1179_vm6  ;;  %vm2279_vm9 = vcmask 130048  }
  0x2c   :  { %v75_v11 = vsel %vm73_vm0, %v60_v8, 0  ;;  %v78_v12 = vsel %vm73_vm0, %v61_v9, 0  ;;  %v3667_v13 = vpack.c.bf16 %v84_v5, %v81_v4  ;;  %v171_v14 = vsub.f32 %v62_v1, %v81_v4  ;;  %v608_v47 = vld [vmem:[%s3963_s5] sm:$0xff]  ;;  %v609_v48 = vld [vmem:[%s3963_s5 + $0x8] sm:$0xff]  ;;  %v610_v54 = vld [vmem:[%s3963_s5 + $0x10] sm:$0xff] }
  0x2d   :  { %v178_v15 = vsub.f32 %v63_v2, %v84_v5  ;;  %v185_v16 = vsub.f32 %v64_v3, %v87_v7  ;;  %v192_v17 = vsub.f32 %v65_v6, %v90_v10  ;;  %v149_v18 = vand.u32 4294901760, %v75_v11 }
  0x2e   :  { %v159_v19 = vand.u32 4294901760, %v78_v12  ;;  %v172_v20 = vand.u32 4294901760, %v171_v14  ;;  %v3263_v22 = vpack.c.bf16 %v90_v10, %v87_v7  ;;  %3260 = vmatprep.subr.bf16.mxu1 %v3667_v13  ;;  %v619_v49 = vand.u32 4294901760, %v608_v47 }
  0x2f   :  { %v179_v21 = vand.u32 4294901760, %v178_v15  ;;  %v186_v23 = vand.u32 4294901760, %v185_v16  ;;  %v193_v24 = vand.u32 4294901760, %v192_v17  ;;  %2996 = vmatprep.mubr.f32.mxu0 %v149_v18  ;;  %v150_v25 = vsub.f32 %v75_v11, %v149_v18  ;;  %3262 = vmatpush3.bf16.msra.mxu1 %v3667_v13 }
  0x30   :  { %v160_v26 = vsub.f32 %v78_v12, %v159_v19  ;;  %v173_v27 = vsub.f32 %v171_v14, %v172_v20  ;;  %3264 = vmatprep.subr.bf16.mxu1 %v3263_v22  ;;  %v3275_v43 = vpack.c.bf16 %v178_v15, %v171_v14  ;;  %v3279_v44 = vpack.c.bf16 %v192_v17, %v185_v16 }
  0x31   :  { %v180_v28 = vsub.f32 %v178_v15, %v179_v21  ;;  %v187_v29 = vsub.f32 %v185_v16, %v186_v23  ;;  %v194_v30 = vsub.f32 %v192_v17, %v193_v24  ;;  %v151_v31 = vand.u32 4294901760, %v150_v25  ;;  %v1147_v15 = vld [vmem:[%s3959_s1] sm:$0xff]  ;;  %v1148_v16 = vld [vmem:[%s3959_s1 + $0x8] sm:$0xff] }
  0x32   :  { %v161_v32 = vand.u32 4294901760, %v160_v26  ;;  %v174_v33 = vand.u32 4294901760, %v173_v27  ;;  %v3291_v45 = vpack.c.bf16 %v179_v21, %v172_v20  ;;  %v3295_v46 = vpack.c.bf16 %v193_v24, %v186_v23  ;;  %v1149_v21 = vld [vmem:[%s3959_s1 + $0x10] sm:$0xff] }
  0x33   :  { %v181_v34 = vand.u32 4294901760, %v180_v28  ;;  %v188_v35 = vand.u32 4294901760, %v187_v29  ;;  %v195_v36 = vand.u32 4294901760, %v194_v30  ;;  %3266 = vmatpush3.bf16.msra.mxu1 %v3263_v22  ;;  %v152_v37 = vsub.f32 %v150_v25, %v151_v31 }
  0x34   :  { %v162_v38 = vsub.f32 %v160_v26, %v161_v32  ;;  %v622_v50 = vand.u32 4294901760, %v609_v48  ;;  %v709_v52 = vsub.f32 %v608_v47, %v619_v49  ;;  %v625_v56 = vand.u32 4294901760, %v610_v54 }
  0x35   :  { %v3267_v39 = vpack.c.bf16 %v181_v34, %v174_v33  ;;  %v3271_v40 = vpack.c.bf16 %v195_v36, %v188_v35  ;;  %v153_v41 = vand.u32 4294901760, %v152_v37  ;;  %v730_v0 = vsub.f32 %v611_v55, %v628_v57 }
  0x36   :  { %v163_v42 = vand.u32 4294901760, %v162_v38  ;;  %v3681_v51 = vpack.c.bf16 %v622_v50, %v619_v49  ;;  %v716_v53 = vsub.f32 %v609_v48, %v622_v50  ;;  %v710_v58 = vand.u32 4294901760, %v709_v52 }
  0x37   :  { %3268 = vmatprep.subr.bf16.mxu0 %v3267_v39  ;;  %2985 = vmatprep.mubr.f32.mxu1 %v153_v41  ;;  %v3691_v60 = vpack.c.bf16 %v628_v57, %v625_v56  ;;  %v723_v63 = vsub.f32 %v610_v54, %v625_v56  ;;  %v731_v4 = vand.u32 4294901760, %v730_v0  ;;  %v1212_v17 = vand.u32 4294901760, %v1147_v15 }
  0x38   :  { %3270 = vmatpush3.bf16.msra.mxu0 %v3267_v39  ;;  %2986 = vmatmul.mubr.f32.vlgmr.msra.gmra.mrb[0].mxu1 %v163_v42  ;;  %v717_v59 = vand.u32 4294901760, %v716_v53  ;;  %v711_v61 = vsub.f32 %v709_v52, %v710_v58  ;;  %v3700_v11 = vpack.c.bf16 %v716_v53, %v709_v52  ;;  %v3581_v35 = vmov 0.0|0.0  }
  0x39   :  { %3272 = vmatprep.subr.bf16.mxu0 %v3271_v40  ;;  %3308 = vmatprep.subr.bf16.mxu1 %v3681_v51  ;;  %v724_v3 = vand.u32 4294901760, %v723_v63  ;;  %v732_v7 = vsub.f32 %v730_v0, %v731_v4  ;;  %v3702_v12 = vpack.c.bf16 %v730_v0, %v723_v63  ;;  %v3583_v42 = vmov 0.0  }
  0x3a   :  { %3310 = vmatpush3.bf16.msra.mxu1 %v3681_v51  ;;  %v718_v62 = vsub.f32 %v716_v53, %v717_v59  ;;  %v712_v1 = vand.u32 4294901760, %v711_v61 }
  0x3b   :  { %3312 = vmatprep.subr.bf16.mxu1 %v3691_v60  ;;  %v725_v6 = vsub.f32 %v723_v63, %v724_v3  ;;  %v733_v9 = vand.u32 4294901760, %v732_v7  ;;  %v3706_v14 = vpack.c.bf16 %v731_v4, %v724_v3 }
  0x3c   :  { %3274 = vmatpush3.bf16.msra.mxu0 %v3271_v40  ;;  %v719_v2 = vand.u32 4294901760, %v718_v62 }
  0x3d   :  { %3276 = vmatprep.subr.bf16.mxu0 %v3275_v43  ;;  %v726_v8 = vand.u32 4294901760, %v725_v6 }
  0x3e   :  { %3314 = vmatpush3.bf16.msra.mxu1 %v3691_v60  ;;  %v3695_v5 = vpack.c.bf16 %v719_v2, %v712_v1 }
  0x3f   :  { %2997 = vmatmul.mubr.f32.vlgmr.msra.gmra.mrb[0].mxu0 %v159_v19  ;;  %v3698_v10 = vpack.c.bf16 %v733_v9, %v726_v8 }
  0x40   :  { %3278 = vmatpush3.bf16.msra.mxu0 %v3275_v43  ;;  %3007 = vmatprep.mubr.f32.mxu0 %v150_v25  ;;  %v1218_v25 = vand.u32 4294901760, %v1149_v21 }
  0x41   :  { %3280 = vmatprep.subr.bf16.mxu0 %v3279_v44  ;;  %3316 = vmatprep.subr.bf16.mxu1 %v3695_v5 }
  0x42   :  { %v1306_v29 = vsub.f32 %v1149_v21, %v1218_v25 }
  0x44   :  { %3282 = vmatpush3.bf16.msra.mxu0 %v3279_v44  ;;  %v1307_v33 = vand.u32 4294901760, %v1306_v29 }
  0x45   :  { %3284 = vmatprep.subr.bf16.mxu0 %v3667_v13 }
  0x46   :  { %v1308_v37 = vsub.f32 %v1306_v29, %v1307_v33 }
  0x47   :  { %3008 = vmatmul.mubr.f32.vlgmr.msra.gmra.mrb[0].mxu0 %v160_v26 }
  0x48   :  { %3286 = vmatpush3.bf16.msra.mxu0 %v3667_v13  ;;  %3018 = vmatprep.mubr.f32.mxu0 %v151_v31  ;;  %v1309_v39 = vand.u32 4294901760, %v1308_v37 }
  0x49   :  { %3288 = vmatprep.subr.bf16.mxu0 %v3263_v22 }
  0x4c   :  { %3290 = vmatpush3.bf16.msra.mxu0 %v3263_v22 }
  0x4d   :  { %3292 = vmatprep.subr.bf16.mxu0 %v3291_v45 }
  0x4f   :  { %3019 = vmatmul.mubr.f32.vlgmr.msra.gmra.mrb[0].mxu0 %v161_v32 }
  0x50   :  { %3294 = vmatpush3.bf16.msra.mxu0 %v3291_v45  ;;  %3029 = vmatprep.mubr.f32.mxu0 %v149_v18  ;;  %v1146_v45 = vld [vmem:[%s3964_s6] sm:$0x1] }
  0x51   :  { %3296 = vmatprep.subr.bf16.mxu0 %v3295_v46 }
  0x54   :  { %3298 = vmatpush3.bf16.msra.mxu0 %v3295_v46  ;;  %v1209_v46 = vsel %vm73_vm0, %v1146_v45, 0  ;;  %v1152_v45 = vlaneseq }
  0x55   :  { %3300 = vmatprep.subr.bf16.mxu0 %v3667_v13  ;;  %v3739_v47 = vand.u32 4294901760, %v1209_v46 }
  0x57   :  { %3030 = vmatmul.mubr.f32.vlgmr.msra.gmra.mrb[0].mxu0 %v159_v19  ;;  %v3742_v48 = vsub.f32 %v1209_v46, %v3739_v47  ;;  %v3832_v46 = vshrl.u32 %v1152_v45, 7 }
  0x58   :  { %3302 = vmatpush3.bf16.msra.mxu0 %v3667_v13  ;;  %3040 = vmatprep.mubr.f32.mxu0 %v149_v18  ;;  %v3704_v13 = vpack.c.bf16 %v717_v59, %v710_v58  ;;  %v1215_v18 = vand.u32 4294901760, %v1148_v16  ;;  %v2818_v59 = vld [vmem:[%s3962_s4] ss:$0 sm:$0xff] }
  0x59   :  { %3304 = vmatprep.subr.bf16.mxu0 %v3263_v22  ;;  %v1282_v49 = vand.u32 4294901760, %v3742_v48 }
  0x5a   :  { %v1299_v20 = vsub.f32 %v1148_v16, %v1215_v18  ;;  %v3727_v43 = vpack.c.bf16 %v1215_v18, %v1212_v17 }
  0x5b   :  { %v1283_v50 = vsub.f32 %v3742_v48, %v1282_v49 }
  0x5c   :  { %3306 = vmatpush3.bf16.msra.mxu0 %v3263_v22  ;;  %v1150_v22 = vld [vmem:[%s3959_s1 + $0x18] sm:$0xff]  ;;  %v1300_v24 = vand.u32 4294901760, %v1299_v20 }
  0x5d   :  { %v1221_v26 = vand.u32 4294901760, %v1150_v22  ;;  %3355 = vmatprep.subr.bf16.mxu0 %v3581_v35  ;;  %v1284_v53 = vand.u32 4294901760, %v1283_v50 }
  0x5e   :  { %v1301_v28 = vsub.f32 %v1299_v20, %v1300_v24 }
  0x5f   :  { %3041 = vmatmul.mubr.f32.vlgmr.msra.gmra.mrb[0].mxu0 %v159_v19  ;;  %v1292_v19 = vsub.f32 %v1147_v15, %v1212_v17  ;;  %v1313_v30 = vsub.f32 %v1150_v22, %v1221_v26  ;;  %v3731_v44 = vpack.c.bf16 %v1221_v26, %v1218_v25 }
  0x60   :  { %v1302_v32 = vand.u32 4294901760, %v1301_v28  ;;  %3117 = vmatprep.mubr.msk.f32.mxu0 %vm3582_vm1, %v3583_v42  ;;  %3357 = vmatpush3.bf16.msra.mxu0 %v3727_v43 }
  0x61   :  { %v1293_v23 = vand.u32 4294901760, %v1292_v19  ;;  %v1314_v34 = vand.u32 4294901760, %v1313_v30  ;;  %3358 = vmatprep.subr.bf16.mxu0 %v3581_v35  ;;  %v3368_v52 = vpack.c.bf16 %v1299_v20, %v1292_v19  ;;  %v3371_v54 = vpack.c.bf16 %v1313_v30, %v1306_v29 }
  0x63   :  { %v1294_v27 = vsub.f32 %v1292_v19, %v1293_v23  ;;  %v1315_v38 = vsub.f32 %v1313_v30, %v1314_v34  ;;  %v3380_v57 = vpack.c.bf16 %v1300_v24, %v1293_v23  ;;  %v3383_v58 = vpack.c.bf16 %v1314_v34, %v1307_v33 }
  0x64   :  { %3360 = vmatpush3.bf16.msra.mxu0 %v3731_v44 }
  0x65   :  { %v1295_v31 = vand.u32 4294901760, %v1294_v27  ;;  %v1316_v40 = vand.u32 4294901760, %v1315_v38  ;;  %3367 = vmatprep.subr.bf16.mxu0 %v3581_v35 }
  0x67   :  { %v3721_v36 = vpack.c.bf16 %v1302_v32, %v1295_v31  ;;  %v3723_v41 = vpack.c.bf16 %v1316_v40, %v1309_v39  ;;  %3118 = vmatmul.mubr.f32.vlgmr.msra.gmra.mrb[2].mxu0 %v1284_v53  ;;  %v1697_v31 = vld [vmem:[#allocation2] sm:$0x1]  ;;  %v3845_v53 = vadd.s32 8, %v3832_v46 }
  0x68   :  { %3369 = vmatpush3.bf16.msra.mxu0 %v3368_v52  ;;  %3139 = vmatprep.mubr.msk.f32.mxu0 %vm3582_vm1, %v3583_v42 }
  0x69   :  { %3370 = vmatprep.subr.bf16.mxu0 %v3581_v35 }
  0x6c   :  { %3372 = vmatpush3.bf16.msra.mxu0 %v3371_v54 }
  0x6d   :  { %3379 = vmatprep.subr.bf16.mxu0 %v3581_v35 }
  0x6f   :  { %3140 = vmatmul.mubr.f32.vlgmr.msra.gmra.mrb[4].mxu0 %v3742_v48  ;;  %v1163_v48 = vsub.s32 1, %v3832_v46 }
  0x70   :  { %3381 = vmatpush3.bf16.msra.mxu0 %v3380_v57  ;;  %3161 = vmatprep.mubr.msk.f32.mxu0 %vm3582_vm1, %v3583_v42 }
  0x71   :  { %3382 = vmatprep.subr.bf16.mxu0 %v3581_v35 }
  0x74   :  { %3384 = vmatpush3.bf16.msra.mxu0 %v3383_v58 }
  0x77   :  { %3162 = vmatmul.mubr.f32.vlgmr.msra.gmra.mrb[6].mxu0 %v3739_v47 }
 0x10b   :  { %v2987_v55 = vpop.f32.mrb[0].mxu1 }
 0x10c   :  { %v155_v56 = vpop.f32.mrb[1].mxu1  ;;  %v166_v61 = vadd.f32 %v2987_v55, %v2818_v59 }
 0x10d   :  { %v156_v62 = vadd.f32 %v2818_v59, %v155_v56 }
 0x132   :  { %v3042_v63 = vpop.f32.mrb[0].mxu0 }
 0x133   :  { %v3760_v0 = vadd.f32 %v3042_v63, %v166_v61  ;;  %v598_v1 = vpop.f32.mrb[1].mxu0 }
 0x134   :  { %v3762_v2 = vadd.f32 %v598_v1, %v156_v62 }
 0x135   :  { %v616_v3 = vsel %vm73_vm0, %v3760_v0, 0  ;;  %v2290_v4 = vand.u32 4294901760, %v3760_v0 }
 0x136   :  { %v697_v6 = vand.u32 4294901760, %v616_v3  ;;  %v613_v7 = vsel %vm73_vm0, %v3762_v2, 0  ;;  %v2287_v8 = vand.u32 4294901760, %v3762_v2 }
 0x137   :  { %v2382_v9 = vsub.f32 %v3760_v0, %v2290_v4  ;;  %v687_v15 = vand.u32 4294901760, %v613_v7 }
 0x138   :  { %v698_v16 = vsub.f32 %v616_v3, %v697_v6  ;;  %v2375_v17 = vsub.f32 %v3762_v2, %v2287_v8 }
 0x139   :  { %v688_v18 = vsub.f32 %v613_v7, %v687_v15  ;;  %v2383_v19 = vand.u32 4294901760, %v2382_v9 }
 0x13a   :  { %v699_v20 = vand.u32 4294901760, %v698_v16  ;;  %v2376_v21 = vand.u32 4294901760, %v2375_v17  ;;  %v3776_v22 = vpack.c.bf16 %v2382_v9, %v2375_v17  ;;  %v1286_v32 = vpop.f32.mrb[2].mxu0 }
 0x13b   :  { %v689_v23 = vand.u32 4294901760, %v688_v18  ;;  %v3119_v33 = vpop.f32.mrb[3].mxu0 }
 0x13c   :  { %v700_v24 = vsub.f32 %v698_v16, %v699_v20  ;;  %v3778_v25 = vpack.c.bf16 %v2383_v19, %v2376_v21 }
 0x13d   :  { %v690_v26 = vsub.f32 %v688_v18, %v689_v23 }
 0x13e   :  { %v701_v28 = vand.u32 4294901760, %v700_v24 }
 0x13f   :  { %v691_v27 = vand.u32 4294901760, %v690_v26 }
 0x141   :  { %3051 = vmatprep.mubr.f32.mxu1 %v691_v27 }
 0x142   :  { %3052 = vmatmul.mubr.f32.vlgmr.msra.gmra.mrb[2].mxu1 %v701_v28 }
 0x143   :  { %3318 = vmatpush3.bf16.msra.mxu1 %v3695_v5  ;;  %3062 = vmatprep.mubr.f32.mxu1 %v687_v15  ;;  %v3823_v5 = vpack.c.bf16 %v2290_v4, %v2287_v8 }
 0x144   :  { %3320 = vmatprep.subr.bf16.mxu1 %v3698_v10 }
 0x147   :  { %3322 = vmatpush3.bf16.msra.mxu1 %v3698_v10 }
 0x148   :  { %3324 = vmatprep.subr.bf16.mxu1 %v3700_v11 }
 0x14a   :  { %3063 = vmatmul.mubr.f32.vlgmr.msra.gmra.mrb[2].mxu1 %v697_v6 }
 0x14b   :  { %3326 = vmatpush3.bf16.msra.mxu1 %v3700_v11  ;;  %3073 = vmatprep.mubr.f32.mxu1 %v688_v18 }
 0x14c   :  { %3328 = vmatprep.subr.bf16.mxu1 %v3702_v12 }
 0x14f   :  { %3330 = vmatpush3.bf16.msra.mxu1 %v3702_v12 }
 0x150   :  { %3332 = vmatprep.subr.bf16.mxu1 %v3681_v51 }
 0x152   :  { %3074 = vmatmul.mubr.f32.vlgmr.msra.gmra.mrb[2].mxu1 %v698_v16 }
 0x153   :  { %3334 = vmatpush3.bf16.msra.mxu1 %v3681_v51  ;;  %3084 = vmatprep.mubr.f32.mxu1 %v689_v23 }
 0x154   :  { %3336 = vmatprep.subr.bf16.mxu1 %v3691_v60 }
 0x157   :  { %3338 = vmatpush3.bf16.msra.mxu1 %v3691_v60 }
 0x158   :  { %3340 = vmatprep.subr.bf16.mxu1 %v3704_v13 }
 0x15a   :  { %3085 = vmatmul.mubr.f32.vlgmr.msra.gmra.mrb[2].mxu1 %v699_v20 }
 0x15b   :  { %3342 = vmatpush3.bf16.msra.mxu1 %v3704_v13  ;;  %3095 = vmatprep.mubr.f32.mxu1 %v687_v15  ;;  %v3584_v13 = vmov 1  }
 0x15c   :  { %3344 = vmatprep.subr.bf16.mxu1 %v3706_v14  ;;  %3498 = vset.pattern.permute.xlu1 %v3584_v13 }
 0x15f   :  { %3346 = vmatpush3.bf16.msra.mxu1 %v3706_v14  ;;  %v3585_v14 = vmov 0  }
 0x160   :  { %3348 = vmatprep.subr.bf16.mxu1 %v3681_v51  ;;  %3497 = vset.pattern.permute.xlu0 %v3585_v14 }
 0x162   :  { %3096 = vmatmul.mubr.f32.vlgmr.msra.gmra.mrb[2].mxu1 %v697_v6 }
 0x163   :  { %3350 = vmatpush3.bf16.msra.mxu1 %v3681_v51  ;;  %3106 = vmatprep.mubr.f32.mxu1 %v687_v15  ;;  %v2377_v51 = vsub.f32 %v2375_v17, %v2376_v21 }
 0x164   :  { %3352 = vmatprep.subr.bf16.mxu1 %v3691_v60 }
 0x165   :  { %v2378_v10 = vand.u32 4294901760, %v2377_v51 }
 0x167   :  { %3354 = vmatpush3.bf16.msra.mxu1 %v3691_v60  ;;  %v2384_v60 = vsub.f32 %v2382_v9, %v2383_v19 }
 0x168   :  { %3361 = vmatprep.subr.bf16.mxu1 %v3581_v35 }
 0x169   :  { %v2385_v11 = vand.u32 4294901760, %v2384_v60 }
 0x16a   :  { %3107 = vmatmul.mubr.f32.vlgmr.msra.gmra.mrb[2].mxu1 %v697_v6 }
 0x16b   :  { %3363 = vmatpush3.bf16.msra.mxu1 %v3721_v36  ;;  %3128 = vmatprep.mubr.msk.f32.mxu1 %vm3582_vm1, %v3583_v42  ;;  %v3828_v12 = vpack.c.bf16 %v2385_v11, %v2378_v10  ;;  %v1457_v36 = vpop.f32.mrb[4].mxu0 }
 0x16c   :  { %3364 = vmatprep.subr.bf16.mxu1 %v3581_v35  ;;  %v3141_v37 = vpop.f32.mrb[5].mxu0 }
 0x16d   :  { %v1617_v40 = vpop.f32.mrb[6].mxu0 }
 0x16f   :  { %3366 = vmatpush3.bf16.msra.mxu1 %v3723_v41  ;;  %v3163_v41 = vpop.f32.mrb[7].mxu0 }
 0x170   :  { %3373 = vmatprep.subr.bf16.mxu1 %v3581_v35 }
 0x172   :  { %3129 = vmatmul.mubr.f32.vlgmr.msra.gmra.mrb[4].mxu1 %v3739_v47 }
 0x173   :  { %3375 = vmatpush3.bf16.msra.mxu1 %v3727_v43  ;;  %3150 = vmatprep.mubr.msk.f32.mxu1 %vm3582_vm1, %v3583_v42 }
 0x174   :  { %3376 = vmatprep.subr.bf16.mxu1 %v3581_v35 }
 0x177   :  { %3378 = vmatpush3.bf16.msra.mxu1 %v3731_v44 }
 0x178   :  { %3385 = vmatprep.subr.bf16.mxu1 %v3581_v35 }
 0x17a   :  { %3151 = vmatmul.mubr.f32.vlgmr.msra.gmra.mrb[6].mxu1 %v1282_v49  ;;  %v1151_v49 = vld [vmem:[%s3960_s2] sm:$0x3]  ;;  %s3586_s2 = smov [#allocation8]  }
 0x17b   :  { %3387 = vmatpush3.bf16.msra.mxu1 %v3727_v43  ;;  %3172 = vmatprep.mubr.msk.f32.mxu1 %vm3582_vm1, %v3583_v42  ;;  %v1164_v52 = vrot.slane %v1151_v49, %v1163_v48  ;;  %s2805_s27 = sshll.u32 %s3586_s2, 4  ;;  %s2806_s27 = int_to_ptr.vmem [resolvable:$true] %s2805_s27 }
 0x17c   :  { %3388 = vmatprep.subr.bf16.mxu1 %v3581_v35  ;;  %s3549_s28 = scalar_lea.vmem %s2806_s27, 256  ;;  %p3554_p3 = scmp.lt.s32.totalorder %s2806_s27, %s2806_s27 }
 0x17d   :  { %vm1165_vm2 = vcmp.eq.s32.totalorder %v3832_v46, %v1164_v52  ;;  %vm1166_vm4 = vcmp.eq.s32.totalorder %v3845_v53, %v1164_v52  ;;  %p3550_p2 = scmp.ne.s32.totalorder %s2806_s27, %s3549_s28  ;;  %p3555_p4 = scmp.lt.s32.totalorder %s3549_s28, %s3549_s28 }
 0x17f   :  { %3390 = vmatpush3.bf16.msra.mxu1 %v3731_v44  ;;  %p3556_p5 = por %p3555_p4, %p3554_p3 }
 0x180   :  { %3422 = vmatprep.subr.bf16.mxu1 %v3823_v5 }
 0x181   :  { %p3557_p6 = pnand %p3556_p5, %p3550_p2 }
 0x182   :  { %3173 = vmatmul.mubr.f32.vlgmr.msra.gmra.mrb[8].mxu1 %v3739_v47  ;;  %v3835_v47 = vsub.s32 0, %v3832_v46 }
 0x183   :  { %3424 = vmatpush3.bf16.msra.mxu1 %v3823_v5 }
 0x184   :  { %3426 = vmatprep.subr.bf16.mxu1 %v3828_v12  ;;  %v3842_v50 = vrot.slane %v1151_v49, %v3835_v47 }
 0x186   :  { %vm1159_vm3 = vcmp.eq.s32.totalorder %v3832_v46, %v3842_v50  ;;  %vm1160_vm5 = vcmp.eq.s32.totalorder %v3845_v53, %v3842_v50 }
 0x23d   :  { %v3108_v29 = vpop.f32.mrb[2].mxu1 }
 0x23e   :  { %v1136_v30 = vpop.f32.mrb[3].mxu1 }
 0x23f   :  { %1190 = vperm.xlu1 %3498, %v1136_v30   ;;  %1169 = vperm.xlu0 %3497, %v1136_v30  }
 0x243   :  { %1194 = vperm.xlu1 %3498, %v3108_v29   ;;  %1174 = vperm.xlu0 %3497, %v3108_v29  }
 0x245   :  { %v1377_v34 = vpop.f32.mrb[4].mxu1 }
 0x246   :  { %v3130_v35 = vpop.f32.mrb[5].mxu1 }
 0x247   :  { %1700 = vperm.xlu0 %3497, %v1697_v31  }
 0x24d   :  { %v1534_v38 = vpop.f32.mrb[6].mxu1 }
 0x24e   :  { %v3152_v39 = vpop.f32.mrb[7].mxu1 }
 0x24f   :  { %v2820_v39 = vsel %vm1166_vm4, 1.0, %v3583_v42 }
 0x250   :  { %v1775_v41 = vsel %vm1179_vm6, %v2820_v39, 0 }
 0x255   :  { %v1692_v43 = vpop.f32.mrb[8].mxu1 }
 0x256   :  { %v3174_v44 = vpop.f32.mrb[9].mxu1 }
 0x257   :  { %v1873_v44 = vsub.f32 %v1775_v41, %v1775_v41 }
 0x259   :  { %v1874_v49 = vand.u32 4294901760, %v1873_v44 }
 0x25b   :  { %v1875_v52 = vsub.f32 %v1873_v44, %v1874_v49 }
 0x2be   :  { %v1191_v54 = vpop.permute.xlu1 %1190  ;;  %v1170_v55 = vpop.permute.xlu0 %1169 }
 0x2bf   :  { %v1197_v56 = vsel %vm1165_vm2, %v1191_v54, 0.0  ;;  %v1177_v57 = vsel %vm1159_vm3, %v1170_v55, 0.0 }
 0x2c0   :  { %v1199_v63 = vsel %vm1179_vm6, %v1197_v56, 0.0  ;;  %v1180_v1 = vsel %vm1179_vm6, %v1177_v57, 0.0  ;;  %v1876_v56 = vand.u32 4294901760, %v1875_v52 }
 0x2c2   :  { %v1195_v58 = vpop.permute.xlu1 %1194  ;;  %v1175_v59 = vpop.permute.xlu0 %1174 }
 0x2c3   :  { %v1198_v61 = vsel %vm1166_vm4, %v1195_v58, 0.0  ;;  %v1178_v62 = vsel %vm1160_vm5, %v1175_v59, 0.0 }
 0x2c4   :  { %v1200_v3 = vsel %vm1179_vm6, %v1198_v61, 0.0  ;;  %v1181_v4 = vsel %vm1179_vm6, %v1178_v62, 0.0 }
 0x2c5   :  { %v1201_v6 = vadd.f32 %v1200_v3, %v1199_v63  ;;  %v1182_v7 = vadd.f32 %v1181_v4, %v1180_v1 }
 0x2c6   :  { %v1701_v10 = vpop.permute.xlu0 %1700 }
 0x2c7   :  { %v1183_v8 = vrot.slane %v1182_v7, 4  ;;  %v1202_v9 = vrot.slane %v1201_v6, 4  ;;  %v1706_v14 = vrot.slane %v1701_v10, %v3835_v47 }
 0x2c9   :  { %v1184_v15 = vadd.f32 %v1183_v8, %v1182_v7  ;;  %v1203_v17 = vadd.f32 %v1202_v9, %v1201_v6 }
 0x2cb   :  { %v1185_v16 = vrot.slane %v1184_v15, 2  ;;  %v1204_v20 = vrot.slane %v1203_v17, 2 }
 0x2cd   :  { %v1186_v18 = vadd.f32 %v1185_v16, %v1184_v15  ;;  %v1205_v26 = vadd.f32 %v1204_v20, %v1203_v17 }
 0x2cf   :  { %v1187_v19 = vrot.slane %v1186_v18, 1  ;;  %v1206_v51 = vrot.slane %v1205_v26, 1 }
 0x2d1   :  { %v1188_v21 = vadd.f32 %v1187_v19, %v1186_v18  ;;  %v1207_v11 = vadd.f32 %v1206_v51, %v1205_v26 }
 0x2d3   :  { %v1287_v23 = vadd.f32 %v1286_v32, %v1188_v21 }
 0x2d5   :  { %v1378_v24 = vadd.f32 %v1377_v34, %v1287_v23 }
 0x2d7   :  { %v1458_v27 = vadd.f32 %v1457_v36, %v1378_v24 }
 0x2d9   :  { %v1535_v28 = vadd.f32 %v1534_v38, %v1458_v27  ;;  %v2819_v38 = vsel %vm1165_vm2, 1.0, %v3583_v42 }
 0x2da   :  { %v3885_v45 = vpack.c.bf16 %v2820_v39, %v2819_v38 }
 0x2db   :  { %v1618_v60 = vadd.f32 %v1617_v40, %v1535_v28  ;;  %v1772_v40 = vsel %vm1179_vm6, %v2819_v38, 0 }
 0x2dc   :  { %3393 = vmatprep.subr.msk.bf16.mxu0 %vm3889_vm8, %v3885_v45 }
 0x2dd   :  { %v1693_v13 = vadd.f32 %v1692_v43, %v1618_v60  ;;  %v1866_v43 = vsub.f32 %v1772_v40, %v1772_v40  ;;  %3396 = vmatpush3.bf16.xpose.msk.msra.mxu0 %vm3889_vm8, %v3885_v45 }
 0x2df   :  { %v1696_v29 = vadd.f32 %v1693_v13, %v1207_v11  ;;  %v1867_v48 = vand.u32 4294901760, %v1866_v43 }
 0x2e1   :  { %v1707_v30 = vadd.f32 %v1706_v14, %v1696_v29  ;;  %v1868_v42 = vsub.f32 %v1866_v43, %v1867_v48  ;;  %v3411_v58 = vpack.c.bf16 %v1874_v49, %v1867_v48  ;;  %v3401_v29 = vpack.c.bf16 %v1873_v44, %v1866_v43 }
 0x2e3   :  { %vm1708_vm7 = vcmp.ge.f32.partialorder %v1707_v30, 0.0  ;;  %v1709_v31 = vmul.f32 0.2, %v1707_v30  ;;  %v1869_v55 = vand.u32 4294901760, %v1868_v42 }
 0x2e5   :  { %v1710_v33 = vsel %vm1708_vm7, %v1707_v30, %v1709_v31  ;;  %v3397_v57 = vpack.c.bf16 %v1876_v56, %v1869_v55 }
 0x2e6   :  { %v1714_v35 = vrot.slane %v1710_v33, %v3835_v47 }
 0x2e7   :  { %3398 = vmatprep.subr.bf16.mxu0 %v3397_v57 }
 0x2e8   :  { %v1716_v32 = vsel %vm1160_vm5, %v1714_v35, -1e+30  ;;  %v1715_v34 = vsel %vm1159_vm3, %v1714_v35, -1e+30 }
 0x2e9   :  { %v1720_v36 = vsel %vm1179_vm6, %v1716_v32, -inf  ;;  %v1717_v37 = vsel %vm1179_vm6, %v1715_v34, -inf }
 0x2ea   :  { %1721 = vmax.xlane.f32.xlu0 %v1720_v36  ;;  %1718 = vmax.xlane.f32.xlu1 %v1717_v37 }
 0x377   :  { %v1722_v59 = vpop.xlane.xlu0 %1721  ;;  %v1719_v61 = vpop.xlane.xlu1 %1718 }
 0x378   :  { %v1724_v62 = vsel %vm1160_vm5, %v1722_v59, 0.0  ;;  %v1723_v63 = vsel %vm1159_vm3, %v1719_v61, 0.0 }
 0x379   :  { %v1726_v1 = vsel %vm1179_vm6, %v1724_v62, 0.0  ;;  %v1725_v3 = vsel %vm1179_vm6, %v1723_v63, 0.0 }
 0x37a   :  { %v1727_v4 = vadd.f32 %v1726_v1, %v1725_v3 }
 0x37c   :  { %v1728_v6 = vrot.slane %v1727_v4, 4 }
 0x37e   :  { %v1729_v7 = vadd.f32 %v1728_v6, %v1727_v4 }
 0x380   :  { %v1730_v8 = vrot.slane %v1729_v7, 2 }
 0x382   :  { %v1731_v9 = vadd.f32 %v1730_v8, %v1729_v7 }
 0x384   :  { %v1732_v15 = vrot.slane %v1731_v9, 1 }
 0x386   :  { %v1733_v16 = vadd.f32 %v1732_v15, %v1731_v9 }
 0x388   :  { %v1734_v17 = vsub.f32 %v1710_v33, %v1733_v16 }
 0x38a   :  { %v1735_v18 = vmul.f32 1.442695, %v1734_v17 }
 0x38c   :  { %3499 = vpow2.f32 %v1735_v18 }
 0x396   :  { %v3500_v19 = vpop.eup %3499 }
 0x397   :  { %v1740_v20 = vrot.slane %v3500_v19, %v3835_v47 }
 0x399   :  { %v1742_v21 = vsel %vm1160_vm5, %v1740_v20, 0.0  ;;  %v1741_v23 = vsel %vm1159_vm3, %v1740_v20, 0.0 }
 0x39a   :  { %v1746_v24 = vsel %vm1179_vm6, %v1742_v21, 0.0  ;;  %v1769_v26 = vsel %vm1179_vm6, %v1742_v21, 0  ;;  %v1743_v27 = vsel %vm1179_vm6, %v1741_v23, 0.0  ;;  %v1766_v28 = vsel %vm1179_vm6, %v1741_v23, 0 }
 0x39b   :  { %v1854_v51 = vand.u32 4294901760, %v1769_v26  ;;  %1747 = vadd.xlane.f32.xlu1 %v1746_v24  ;;  %v1844_v60 = vand.u32 4294901760, %v1766_v28  ;;  %1744 = vadd.xlane.f32.xlu0 %v1743_v27 }
 0x39d   :  { %v1855_v47 = vsub.f32 %v1769_v26, %v1854_v51  ;;  %v1845_v10 = vsub.f32 %v1766_v28, %v1844_v60 }
 0x39f   :  { %v1856_v53 = vand.u32 4294901760, %v1855_v47  ;;  %v1846_v11 = vand.u32 4294901760, %v1845_v10 }
 0x3a1   :  { %v1847_v13 = vsub.f32 %v1845_v10, %v1846_v11  ;;  %v1857_v14 = vsub.f32 %v1855_v47, %v1856_v53 }
 0x3a3   :  { %v1848_v46 = vand.u32 4294901760, %v1847_v13  ;;  %v1858_v50 = vand.u32 4294901760, %v1857_v14 }
 0x3a5   :  { %3179 = vmatprep.mubr.f32.mxu0 %v1848_v46 }
 0x3a6   :  { %3180 = vmatmul.mubr.f32.vlgmr.msra.gmra.mrb[8].mxu0 %v1858_v50 }
 0x3a7   :  { %3400 = vmatpush3.bf16.xpose.msra.mxu0 %v3397_v57  ;;  %3186 = vmatprep.mubr.f32.mxu0 %v1844_v60 }
 0x3a8   :  { %3402 = vmatprep.subr.bf16.mxu0 %v3401_v29 }
 0x3ae   :  { %3187 = vmatmul.mubr.f32.vlgmr.msra.gmra.mrb[8].mxu0 %v1854_v51 }
 0x3af   :  { %3404 = vmatpush3.bf16.xpose.msra.mxu0 %v3401_v29  ;;  %3193 = vmatprep.mubr.f32.mxu0 %v1845_v10 }
 0x3b0   :  { %3407 = vmatprep.subr.msk.bf16.mxu0 %vm3889_vm8, %v3885_v45 }
 0x3b6   :  { %3194 = vmatmul.mubr.f32.vlgmr.msra.gmra.mrb[8].mxu0 %v1855_v47 }
 0x3b7   :  { %3410 = vmatpush3.bf16.xpose.msk.msra.mxu0 %vm3889_vm8, %v3885_v45  ;;  %3200 = vmatprep.mubr.f32.mxu0 %v1846_v11 }
 0x3b8   :  { %3412 = vmatprep.subr.bf16.mxu0 %v3411_v58 }
 0x3be   :  { %3201 = vmatmul.mubr.f32.vlgmr.msra.gmra.mrb[8].mxu0 %v1856_v53 }
 0x3bf   :  { %3414 = vmatpush3.bf16.xpose.msra.mxu0 %v3411_v58  ;;  %3207 = vmatprep.mubr.f32.mxu0 %v1844_v60 }
 0x3c0   :  { %3417 = vmatprep.subr.msk.bf16.mxu0 %vm3889_vm8, %v3885_v45 }
 0x3c6   :  { %3208 = vmatmul.mubr.f32.vlgmr.msra.gmra.mrb[8].mxu0 %v1854_v51 }
 0x3c7   :  { %3420 = vmatpush3.bf16.xpose.msk.msra.mxu0 %vm3889_vm8, %v3885_v45  ;;  %3214 = vmatprep.mubr.f32.mxu0 %v1844_v60 }
 0x3ce   :  { %3215 = vmatmul.mubr.f32.vlgmr.msra.gmra.mrb[8].mxu0 %v1854_v51 }
 0x4a1   :  { %v3216_v30 = vpop.f32.mrb[8].mxu0 }
 0x4a2   :  { %v2284_v31 = vsel %vm2279_vm9, %v3216_v30, 0  ;;  %v2269_v33 = vpop.f32.mrb[9].mxu0 }
 0x4a3   :  { %v2363_v35 = vand.u32 4294901760, %v2284_v31  ;;  %v2281_v32 = vsel %vm2279_vm9, %v2269_v33, 0 }
 0x4a4   :  { %v2353_v34 = vand.u32 4294901760, %v2281_v32 }
 0x4a5   :  { %v2364_v36 = vsub.f32 %v2284_v31, %v2363_v35 }
 0x4a6   :  { %v2354_v37 = vsub.f32 %v2281_v32, %v2353_v34 }
 0x4a7   :  { %v2365_v38 = vand.u32 4294901760, %v2364_v36 }
 0x4a8   :  { %v2355_v39 = vand.u32 4294901760, %v2354_v37 }
 0x4a9   :  { %v2366_v40 = vsub.f32 %v2364_v36, %v2365_v38 }
 0x4aa   :  { %v2356_v41 = vsub.f32 %v2354_v37, %v2355_v39 }
 0x4ab   :  { %v2367_v44 = vand.u32 4294901760, %v2366_v40 }
 0x4ac   :  { %v2357_v43 = vand.u32 4294901760, %v2356_v41 }
 0x4ae   :  { %3221 = vmatprep.mubr.f32.mxu1 %v2357_v43 }
 0x4af   :  { %3222 = vmatmul.mubr.f32.vlgmr.msra.gmra.mrb[10].mxu1 %v2367_v44 }
 0x4b0   :  { %3428 = vmatpush3.bf16.msra.mxu1 %v3828_v12  ;;  %3228 = vmatprep.mubr.f32.mxu1 %v2353_v34  ;;  %v1745_v12 = vpop.xlane.xlu0 %1744 }
 0x4b1   :  { %3430 = vmatprep.subr.bf16.mxu1 %v3776_v22  ;;  %vm1749_vm11 = vcmp.gt.f32.partialorder %v1745_v12, 0.0 }
 0x4b2   :  { %v1751_v48 = vsel %vm1749_vm11, %v1745_v12, 1.0 }
 0x4b7   :  { %3229 = vmatmul.mubr.f32.vlgmr.msra.gmra.mrb[10].mxu1 %v2363_v35 }
 0x4b8   :  { %3432 = vmatpush3.bf16.msra.mxu1 %v3776_v22  ;;  %3235 = vmatprep.mubr.f32.mxu1 %v2354_v37  ;;  %v1748_v22 = vpop.xlane.xlu1 %1747 }
 0x4b9   :  { %3434 = vmatprep.subr.bf16.mxu1 %v3823_v5  ;;  %vm1750_vm10 = vcmp.gt.f32.partialorder %v1748_v22, 0.0 }
 0x4ba   :  { %v1752_v45 = vsel %vm1750_vm10, %v1748_v22, 1.0 }
 0x4bb   :  { %3501 = vrcp.f32 %v1752_v45 }
 0x4bc   :  { %3503 = vrcp.f32 %v1751_v48 }
 0x4bf   :  { %3236 = vmatmul.mubr.f32.vlgmr.msra.gmra.mrb[10].mxu1 %v2364_v36 }
 0x4c0   :  { %3436 = vmatpush3.bf16.msra.mxu1 %v3823_v5  ;;  %3242 = vmatprep.mubr.f32.mxu1 %v2355_v39 }
 0x4c1   :  { %3438 = vmatprep.subr.bf16.mxu1 %v3778_v25 }
 0x4c5   :  { %v3502_v49 = vpop.eup %3501 }
 0x4c6   :  { %v3504_v54 = vpop.eup %3503  ;;  %v1756_v42 = vmul.f32 %v3502_v49, %v1752_v45 }
 0x4c7   :  { %3243 = vmatmul.mubr.f32.vlgmr.msra.gmra.mrb[10].mxu1 %v2365_v38 }
 0x4c8   :  { %3440 = vmatpush3.bf16.msra.mxu1 %v3778_v25  ;;  %3249 = vmatprep.mubr.f32.mxu1 %v2353_v34  ;;  %v1755_v25 = vmul.f32 %v3504_v54, %v1751_v48  ;;  %v1758_v52 = vsub.f32 2.0, %v1756_v42 }
 0x4c9   :  { %3442 = vmatprep.subr.bf16.mxu1 %v3823_v5 }
 0x4ca   :  { %v1757_v55 = vsub.f32 2.0, %v1755_v25  ;;  %v1760_v56 = vmul.f32 %v3502_v49, %v1758_v52 }
 0x4cc   :  { %v1759_v58 = vmul.f32 %v3504_v54, %v1757_v55 }
 0x4cf   :  { %3250 = vmatmul.mubr.f32.vlgmr.msra.gmra.mrb[10].mxu1 %v2363_v35 }
 0x4d0   :  { %3444 = vmatpush3.bf16.msra.mxu1 %v3823_v5  ;;  %3256 = vmatprep.mubr.f32.mxu1 %v2353_v34 }
 0x4d7   :  { %3257 = vmatmul.mubr.f32.vlgmr.msra.gmra.mrb[10].mxu1 %v2363_v35 }
 0x5aa   :  { %v3258_v57 = vpop.f32.mrb[10].mxu1 }
 0x5ab   :  { %v2789_v5 = vmul.f32 %v3258_v57, %v1760_v56  ;;  %v2778_v59 = vpop.f32.mrb[11].mxu1 }
 0x5ac   :  { %v2788_v61 = vmul.f32 %v2778_v59, %v1759_v58 }
 0x5ad   :  { %v2791_v62 = vadd.f32 %v3760_v0, %v2789_v5 }
 0x5ae   :  { %v2790_v63 = vadd.f32 %v3762_v2, %v2788_v61 }
 0x5af   :  { %vm2793_vm12 = vcmp.ge.f32.partialorder %v2791_v62, 0.0  ;;  %v2795_v1 = vmul.f32 0.2, %v2791_v62 }
 0x5b0   :  { %vm2792_vm13 = vcmp.ge.f32.partialorder %v2790_v63, 0.0  ;;  %v2794_v3 = vmul.f32 0.2, %v2790_v63 }
 0x5b1   :  { %v2797_v4 = vsel %vm2793_vm12, %v2791_v62, %v2795_v1 }
 0x5b2   :  { %v2796_v6 = vsel %vm2792_vm13, %v2790_v63, %v2794_v3  ;;  %2799 = vst.msk [vmem:[#allocation8 + $0x8] sm:$0xff] %vm73_vm0, %v2797_v4 }
 0x5b3   :  { %2798 = vst.msk [vmem:[#allocation8] sm:$0xff] %vm73_vm0, %v2796_v6 }
 0x5b4   :  { %3560 = shalt.err (!%p3557_p6)
}
 0x5b5   :  { %s3561_s30 = scalar_lea.hbm %s3966_s8, 256 }
 0x5b6   :  { %p3562_p7 = scmp.ne.s32.totalorder %s3966_s8, %s3561_s30  ;;  %p3565_p8 = scmp.lt.u32.totalorder %s3561_s30, %s3966_s8 }
 0x5b8   :  { %p3567_p9 = pnand %p3565_p8, %p3562_p7 }
 0x5ba   :  { %3570 = shalt.err (!%p3567_p9)
}
 0x5bb   :  { %2811 = dma.vmem_to_hbm [thread:$0]  %s2806_s27, 256, %s3966_s8, [#allocation5], %s3578_s16, %s3578_s16, %s3579_s17  }
 0x5bc   :  { %3575 = dma.done.wait [#allocation5], 256  }
 0x5bd   :  { %3576 = vsyncadd [#allocation5], 4294967040 }
 0x5be   :  { %2815 = vsyncpa [#allocation4], 1 }
 0x5bf   :  { %2816 = vsyncpa [#allocation7], 1 }
 0x5c0   :  { %2817 = vsyncpa [#allocation5], 1 }

</bundles_post_ra>
